<compile_context>
chip_gen: v7x
topology: tpu7x:2x2x1
jax: 0.10.0
libtpu: 0.0.40
codegen_flags: <defaults>
</compile_context>

<pallas_src>
import functools

import numpy as np
import jax
import jax.numpy as jnp
from jax.experimental import pallas as pl
from jax.experimental.pallas import tpu as pltpu

C_LOWPASS = 4
LN_EPS = 1e-12


def _round_up(x, m):
    return ((x + m - 1) // m) * m


def _vmem_capacity_bytes() -> int:
    try:
        return int(pltpu.get_tpu_info().vmem_capacity_bytes)
    except Exception:  # conservative fallback sized for v7x
        return 64 * 1024 * 1024


@functools.lru_cache(maxsize=None)
def _lowpass_factors(seq_len: int, c: int):
    """Exact low-rank factorization of the ortho rfft -> zero-high -> irfft projector.

    Returns (U, V, rpad) with U @ V == P and P @ v == irfft(zero_high(rfft(v))).
    rank = min(2c-1, S); padded to a multiple of 8 sublanes.  Built once per
    (seq_len, c) on the host in float64, stored in f32 (no bf16 quantization).
    """
    eye = np.eye(seq_len, dtype=np.float64)
    spec = np.fft.rfft(eye, axis=0, norm="ortho")
    spec[c:, :] = 0.0
    proj = np.fft.irfft(spec, n=seq_len, axis=0, norm="ortho")
    u, s, vt = np.linalg.svd(proj)
    rank = max(1, int(np.sum(s > 1e-9 * s[0])))
    rpad = _round_up(rank, 8)
    u_f = np.zeros((seq_len, rpad), dtype=np.float32)
    v_f = np.zeros((rpad, seq_len), dtype=np.float32)
    u_f[:, :rank] = u[:, :rank] * s[:rank]
    v_f[:rank, :] = vt[:rank, :]
    return jnp.asarray(u_f), jnp.asarray(v_f), rpad


@functools.lru_cache(maxsize=None)
def _block_matrices(tn: int, hidden: int, n_real: int, bpad: int):
    """Block-average (TN,BPAD) and block-broadcast (BPAD,TN) matrices for the slab LN.

    Columns >= n_real (lane padding) get zero rows/columns: they contribute nothing
    to any block mean and produce zeros that the wrapper slices off.
    """
    e = np.zeros((tn, bpad), dtype=np.float32)
    eb = np.zeros((bpad, tn), dtype=np.float32)
    for col in range(min(tn, n_real)):
        blk = col // hidden
        e[col, blk] = 1.0 / hidden
        eb[blk, col] = 1.0
    return jnp.asarray(e), jnp.asarray(eb)


# ---------------------------------------------------------------------------
# Kernels
# ---------------------------------------------------------------------------

def _freq_slab_kernel(x_ref, u_ref, v_ref, cl_ref, cx_ref, g_ref, b_ref,
                      e_ref, eb_ref, o_ref, vx_ref):
    """One (TR, TN) output tile of the packed (S, B*H) slab.

    x_ref holds the full-S column slab (K dim of the DFT projection).  V @ x is
    computed once per column tile (first row step) into the vx scratch and reused
    by every row tile of that column.
    """
    tr = o_ref.shape[0]

    @pl.when(pl.program_id(1) == 0)
    def _():
        vx_ref[...] = jnp.dot(v_ref[...], x_ref[...].astype(jnp.float32),
                              preferred_element_type=jnp.float32)       # (R, TN)

    row0 = pl.multiple_of(pl.program_id(1) * tr, tr)
    x = x_ref[pl.ds(row0, tr), :].astype(jnp.float32)                   # (TR, TN)
    low = jnp.dot(u_ref[...], vx_ref[...],
                  preferred_element_type=jnp.float32)                   # (TR, TN)

    # Dropout(p=0.5) is eval-mode identity; mixing + residual fused:
    #   h = low + beta^2*(x - low) + x = (1 - beta^2)*low + (1 + beta^2)*x
    h = cl_ref[...] * low + cx_ref[...] * x                             # (TR, TN)

    # Per-H-block LayerNorm over the lane axis via tiny matmuls (no in-kernel
    # reshape/relayout).  The two reductions are independent -> issued back to
    # back; var = E[h^2] - mean^2 (clamped) avoids the serial mean->center->var
    # MXU chain.
    m_red = jnp.dot(h, e_ref[...], preferred_element_type=jnp.float32)       # (TR, BPAD)
    s_red = jnp.dot(h * h, e_ref[...], preferred_element_type=jnp.float32)   # (TR, BPAD)
    mean = jnp.dot(m_red, eb_ref[...], preferred_element_type=jnp.float32)   # (TR, TN)
    msq = jnp.dot(s_red, eb_ref[...], preferred_element_type=jnp.float32)    # (TR, TN)
    var = jnp.maximum(msq - mean * mean, 0.0)
    normed = (h - mean) * jax.lax.rsqrt(var + LN_EPS)
    o_ref[...] = (normed * g_ref[...] + b_ref[...]).astype(o_ref.dtype)


def _freq_direct_kernel(x_ref, u_ref, v_ref, cl_ref, cx_ref, g_ref, b_ref, o_ref):
    """One batch element; x_ref/o_ref are (1, S, H) blocks of the untouched (B,S,H) array."""
    x = x_ref[0].astype(jnp.float32)                                    # (S, H)
    vx = jnp.dot(v_ref[...], x, preferred_element_type=jnp.float32)     # (R, H)
    low = jnp.dot(u_ref[...], vx, preferred_element_type=jnp.float32)   # (S, H)
    h = cl_ref[...] * low + cx_ref[...] * x
    mean = jnp.mean(h, axis=-1, keepdims=True)                          # exact lane reduce
    msq = jnp.mean(h * h, axis=-1, keepdims=True)
    var = jnp.maximum(msq - mean * mean, 0.0)
    normed = (h - mean) * jax.lax.rsqrt(var + LN_EPS)
    o_ref[0] = (normed * g_ref[...] + b_ref[...]).astype(o_ref.dtype)


# ---------------------------------------------------------------------------
# Tiling / VMEM planning
# ---------------------------------------------------------------------------

def _pick_col_tile(batch, hidden, target_lanes):
    """Return (tn, bhp, ncols, n_real_cols, nblk).  tn is always a multiple of 128."""
    bh = batch * hidden
    valid = [bt for bt in range(1, batch + 1)
             if batch % bt == 0 and (bt * hidden) % 128 == 0]
    if valid:
        multi = [bt for bt in valid if batch // bt >= 2]   # >= 2 grid steps (v7x 2 TCs)
        pool = multi if multi else valid
        fits = [bt for bt in pool if bt * hidden <= target_lanes]
        bt = max(fits) if fits else min(pool)
        return bt * hidden, bh, batch // bt, bh, bt
    # No lane tiling that keeps whole H-blocks AND a 128 multiple: pad the lane
    # axis to 128 and use a single column tile (stores stay unmasked `vst`).
    bhp = _round_up(bh, 128)
    return bhp, bhp, 1, bh, batch


def _slab_vmem_need(s, tr, tn, rpad, bpad, x_bytes, o_bytes):
    need = 2 * s * tn * x_bytes                                   # full-S x slab, double-buffered
    need += 2 * tr * tn * o_bytes                                 # output tile, double-buffered
    need += 2 * (tr * rpad + rpad * s + 2 * tn * bpad + 4 * tn) * 4   # U, V, E, Eb, param rows
    need += rpad * tn * 4                                         # V @ x scratch
    need += 7 * tr * tn * 4                                       # live f32 temporaries in the body
    need += 2 << 20                                               # Mosaic internal scratch headroom
    return need


def _pick_row_tile(s, tn, rpad, bpad, x_bytes, o_bytes, budget, prefer_multi):
    cands = [r for r in range(8, s + 1, 8) if s % r == 0] or [s]
    cands = sorted(set(cands), reverse=True)
    target = 512

    def fits(r):
        return _slab_vmem_need(s, r, tn, rpad, bpad, x_bytes, o_bytes) <= budget

    if prefer_multi:   # make the grid >= 2 steps when the lane axis cannot be split
        pref = [r for r in cands if s // r >= 2 and r <= target and fits(r)]
        if pref:
            return pref[0]
    pref = [r for r in cands if r <= target and fits(r)]
    if pref:
        return pref[0]
    pref = [r for r in cands if fits(r)]
    return pref[-1] if pref else cands[-1]


# ---------------------------------------------------------------------------
# Wrappers
# ---------------------------------------------------------------------------

def _frequency_layer_direct(x, u_mat, v_mat, cl, cx, g, b, rpad):
    """H % 128 == 0: consume (B,S,H) directly — no wrapper transpose, lane-dense blocks."""
    B, S, H = x.shape
    x_bytes = x.dtype.itemsize
    cap = _vmem_capacity_bytes()
    need = (2 * S * H * x_bytes * 2 + 6 * S * H * 4
            + 2 * (2 * S * rpad + 4 * H) * 4 + (2 << 20))
    vmem_limit = int(min(int(cap * 0.9), max(need, 16 << 20)))
    # TODO(synk): if S*H ever exceeds the VMEM budget, the S axis would need tiling
    # too (as in the slab path); not needed at BSARec sizes.

    return pl.pallas_call(
        _freq_direct_kernel,
        out_shape=jax.ShapeDtypeStruct((B, S, H), x.dtype),
        grid=(B,),
        in_specs=[
            pl.BlockSpec((1, S, H), lambda bi: (bi, 0, 0)),   # x (original layout)
            pl.BlockSpec((S, rpad), lambda bi: (0, 0)),       # U (grid-invariant, tiny)
            pl.BlockSpec((rpad, S), lambda bi: (0, 0)),       # V
            pl.BlockSpec((1, H), lambda bi: (0, 0)),          # 1 - beta^2
            pl.BlockSpec((1, H), lambda bi: (0, 0)),          # 1 + beta^2
            pl.BlockSpec((1, H), lambda bi: (0, 0)),          # LN gamma
            pl.BlockSpec((1, H), lambda bi: (0, 0)),          # LN beta
        ],
        out_specs=pl.BlockSpec((1, S, H), lambda bi: (bi, 0, 0)),
        compiler_params=pltpu.CompilerParams(
            dimension_semantics=("parallel",),
            vmem_limit_bytes=vmem_limit,
        ),
    )(x, u_mat, v_mat, cl, cx, g, b)


def _frequency_layer_slab(x, u_mat, v_mat, cl, cx, g, b, rpad):
    """H < 128: fold batch into the lane axis -> (S, B*H) slab, padded to 128 lanes."""
    B, S, H = x.shape
    bh = B * H
    x_bytes = x.dtype.itemsize
    cap = _vmem_capacity_bytes()
    budget = int(cap * 0.85)
    target_lanes = 2048 if cap >= (96 << 20) else 1024   # wider tiles on 128 MiB parts

    tn, bhp, ncols, n_real, nblk = _pick_col_tile(B, H, target_lanes)
    bpad = max(8, _round_up(nblk, 8))
    tr = _pick_row_tile(S, tn, rpad, bpad, x_bytes, x_bytes, budget,
                        prefer_multi=(ncols == 1))
    nrows = S // tr

    # Layout plumbing: fold batch into the lane axis (needed because H < 128).
    # This transpose is one extra HBM pass each way — the price of lane-dense,
    # unmasked stores inside the kernel.  Activations stay in x.dtype.
    xt = jnp.transpose(x, (1, 0, 2)).reshape(S, bh)
    if bhp > bh:
        xt = jnp.pad(xt, ((0, 0), (0, bhp - bh)))

    def rep(row):                                  # (1, H) -> (1, BHP), pad cols zeroed
        r = jnp.tile(row, (1, B))
        if bhp > bh:
            r = jnp.pad(r, ((0, 0), (0, bhp - bh)))
        return r

    cl_r, cx_r, g_r, b_r = rep(cl), rep(cx), rep(g), rep(b)
    e_mat, eb_mat = _block_matrices(tn, H, min(tn, n_real), bpad)

    need = _slab_vmem_need(S, tr, tn, rpad, bpad, x_bytes, x_bytes)
    vmem_limit = int(min(int(cap * 0.9), max(need, 16 << 20)))

    out_slab = pl.pallas_call(
        _freq_slab_kernel,
        out_shape=jax.ShapeDtypeStruct((S, bhp), x.dtype),
        grid=(ncols, nrows),
        in_specs=[
            pl.BlockSpec((S, tn), lambda j, i: (0, j)),      # x column slab (all S rows)
            pl.BlockSpec((tr, rpad), lambda j, i: (i, 0)),   # U row tile
            pl.BlockSpec((rpad, S), lambda j, i: (0, 0)),    # V (grid-invariant, tiny)
            pl.BlockSpec((1, tn), lambda j, i: (0, j)),      # 1 - beta^2 (per column tile)
            pl.BlockSpec((1, tn), lambda j, i: (0, j)),      # 1 + beta^2
            pl.BlockSpec((1, tn), lambda j, i: (0, j)),      # LN gamma
            pl.BlockSpec((1, tn), lambda j, i: (0, j)),      # LN beta
            pl.BlockSpec((tn, bpad), lambda j, i: (0, 0)),   # block-average matrix
            pl.BlockSpec((bpad, tn), lambda j, i: (0, 0)),   # block-broadcast matrix
        ],
        out_specs=pl.BlockSpec((tr, tn), lambda j, i: (i, j)),
        scratch_shapes=[pltpu.VMEM((rpad, tn), jnp.float32)],   # V @ x, reused across row tiles
        compiler_params=pltpu.CompilerParams(
            # Column tiles are independent ("parallel"); row tiles reuse the V@x
            # scratch of their column, so that axis stays "arbitrary" (sequential).
            dimension_semantics=("parallel", "arbitrary"),
            vmem_limit_bytes=vmem_limit,
        ),
    )(xt, u_mat, v_mat, cl_r, cx_r, g_r, b_r, e_mat, eb_mat)

    out = out_slab[:, :bh] if bhp > bh else out_slab
    return out.reshape(S, B, H).transpose(1, 0, 2)


def frequency_layer(x, sqrt_beta, ln_gamma, ln_beta, *, c=C_LOWPASS):
    """x: (B, S, H); sqrt_beta: (1, 1, H); ln_gamma/ln_beta: (H,).  Eval-mode forward."""
    B, S, H = x.shape
    u_mat, v_mat, rpad = _lowpass_factors(S, c)

    sb2 = jnp.square(sqrt_beta.reshape(1, H).astype(jnp.float32))
    cl = 1.0 - sb2                 # coefficient on the low-pass branch
    cx = 1.0 + sb2                 # coefficient on the input (residual folded in)
    g = ln_gamma.reshape(1, H).astype(jnp.float32)
    b = ln_beta.reshape(1, H).astype(jnp.float32)

    if H % 128 == 0:
        return _frequency_layer_direct(x, u_mat, v_mat, cl, cx, g, b, rpad)
    return _frequency_layer_slab(x, u_mat, v_mat, cl, cx, g, b, rpad)


# ---------------------------------------------------------------------------
# Reference + demo
# ---------------------------------------------------------------------------

def _reference(x, sqrt_beta, ln_gamma, ln_beta, c=C_LOWPASS):
    """Pure-JAX reference mirroring the PyTorch forward (eval mode)."""
    B, S, H = x.shape
    xf = x.astype(jnp.float32)
    spec = jnp.fft.rfft(xf, axis=1, norm="ortho")
    mask = (jnp.arange(spec.shape[1]) < c)[None, :, None]
    spec = spec * mask
    low = jnp.fft.irfft(spec, n=S, axis=1, norm="ortho")
    high = xf - low
    h = low + (sqrt_beta.astype(jnp.float32) ** 2) * high + xf
    mean = jnp.mean(h, axis=-1, keepdims=True)
    var = jnp.mean((h - mean) ** 2, axis=-1, keepdims=True)
    return (h - mean) / jnp.sqrt(var + LN_EPS) * ln_gamma + ln_beta


if __name__ == "__main__":
    key = jax.random.PRNGKey(0)
    cases = [
        (2, 8, 32),    # slab path, lane axis padded 64 -> 128, single grid step
        (4, 16, 32),   # slab path, one 128-lane column tile, two S-row tiles
        (8, 8, 64),    # slab path, two 256-lane column tiles (E shared across tiles)
        (2, 8, 128),   # H % 128 == 0 -> direct (B,S,H) path, no wrapper transpose
    ]
    for B, S, H in cases:
        kx, kb, key = jax.random.split(key, 3)
        x = jax.random.normal(kx, (B, S, H), dtype=jnp.float32)
        sqrt_beta = jax.random.normal(kb, (1, 1, H), dtype=jnp.float32)  # nn.Parameter(randn)
        ln_gamma = jnp.ones((H,), dtype=jnp.float32)                     # LayerNorm default init
        ln_beta = jnp.zeros((H,), dtype=jnp.float32)

        out = jax.block_until_ready(frequency_layer(x, sqrt_beta, ln_gamma, ln_beta))
        ref = _reference(x, sqrt_beta, ln_gamma, ln_beta)

        assert out.shape == x.shape and out.dtype == x.dtype
        err = float(jnp.max(jnp.abs(out - ref)))
        # f32 factors + f32 accumulation (no bf16 projector any more); tolerance only
        # guards MXU pass rounding across hardware generations (was 3e-2 before).
        assert jnp.allclose(out, ref, atol=5e-3, rtol=5e-3), (
            f"(B,S,H)=({B},{S},{H}) mismatch vs reference: max abs diff {err}")

    print("KERNEL_OK")
</pallas_src>

<mosaic_0001>
module attributes {stable_mosaic.version = 11 : i64} {
  func.func @_freq_slab_kernel(%arg0: i32, %arg1: i32, %arg2: memref<8x128xf32, #tpu.memory_space<vmem>>, %arg3: memref<8x8xf32, #tpu.memory_space<vmem>>, %arg4: memref<8x8xf32, #tpu.memory_space<vmem>>, %arg5: memref<1x128xf32, #tpu.memory_space<vmem>>, %arg6: memref<1x128xf32, #tpu.memory_space<vmem>>, %arg7: memref<1x128xf32, #tpu.memory_space<vmem>>, %arg8: memref<1x128xf32, #tpu.memory_space<vmem>>, %arg9: memref<128x8xf32, #tpu.memory_space<vmem>>, %arg10: memref<8x128xf32, #tpu.memory_space<vmem>>, %arg11: memref<8x128xf32, #tpu.memory_space<vmem>>, %arg12: memref<8x128xf32, #tpu.memory_space<vmem>>) attributes {dimension_semantics = [#tpu.dimension_semantics<parallel>, #tpu.dimension_semantics<arbitrary>], iteration_bounds = array<i64: 1, 1>, scalar_prefetch = 0 : i64, scratch_operands = 1 : i64, tpu.core_type = #tpu.core_type<tc>, window_params = [{transform_indices = @transform_0, window_bounds = array<i64: 8, 128>}, {transform_indices = @transform_1, window_bounds = array<i64: 8, 8>}, {pipeline_mode = #tpu.pipeline_mode<synchronous>, transform_indices = @transform_2, window_bounds = array<i64: 8, 8>}, {transform_indices = @transform_3, window_bounds = array<i64: 1, 128>}, {transform_indices = @transform_4, window_bounds = array<i64: 1, 128>}, {transform_indices = @transform_5, window_bounds = array<i64: 1, 128>}, {transform_indices = @transform_6, window_bounds = array<i64: 1, 128>}, {pipeline_mode = #tpu.pipeline_mode<synchronous>, transform_indices = @transform_7, window_bounds = array<i64: 128, 8>}, {pipeline_mode = #tpu.pipeline_mode<synchronous>, transform_indices = @transform_8, window_bounds = array<i64: 8, 128>}, {transform_indices = @transform_9, window_bounds = array<i64: 8, 128>}]} {
    %c0_i32 = arith.constant 0 : i32
    %0 = arith.cmpi eq, %arg1, %c0_i32 : i32
    %1 = arith.extui %0 : i1 to i32
    %c0_i32_0 = arith.constant 0 : i32
    %2 = arith.cmpi ne, %1, %c0_i32_0 : i32
    scf.if %2 {
      %c0_29 = arith.constant 0 : index
      %c0_30 = arith.constant 0 : index
      %42 = vector.load %arg4[%c0_29, %c0_30] : memref<8x8xf32, #tpu.memory_space<vmem>>, vector<8x8xf32>
      %c0_31 = arith.constant 0 : index
      %c0_32 = arith.constant 0 : index
      %43 = vector.load %arg2[%c0_31, %c0_32] : memref<8x128xf32, #tpu.memory_space<vmem>>, vector<8x128xf32>
      %cst_33 = arith.constant dense<0.000000e+00> : vector<8x128xf32>
      %44 = tpu.matmul %42, %43, %cst_33 {dimension_numbers = #tpu.dot_dimension_numbers<[1], [0], [0], [1], [0, 0, 1, 1], [], []>} : vector<8x8xf32>, vector<8x128xf32>, vector<8x128xf32> -> vector<8x128xf32>
      %c0_34 = arith.constant 0 : index
      %c0_35 = arith.constant 0 : index
      %45 = vector.load %arg12[%c0_34, %c0_35] : memref<8x128xf32, #tpu.memory_space<vmem>>, vector<8x128xf32>
      tpu.vector_store %arg12[%c0_34, %c0_35], %44 {strides = array<i32>} : memref<8x128xf32, #tpu.memory_space<vmem>>, vector<8x128xf32>,
    } else {
    }
    %c8_i32 = arith.constant 8 : i32
    %3 = arith.muli %arg1, %c8_i32 : i32
    %4 = tpu.assume_multiple %3, 8 : i32
    %5 = arith.index_cast %4 : i32 to index
    %c0 = arith.constant 0 : index
    %6 = vector.load %arg2[%5, %c0] : memref<8x128xf32, #tpu.memory_space<vmem>>, vector<8x128xf32>
    %c0_1 = arith.constant 0 : index
    %c0_2 = arith.constant 0 : index
    %7 = vector.load %arg3[%c0_1, %c0_2] : memref<8x8xf32, #tpu.memory_space<vmem>>, vector<8x8xf32>
    %c0_3 = arith.constant 0 : index
    %c0_4 = arith.constant 0 : index
    %8 = vector.load %arg12[%c0_3, %c0_4] : memref<8x128xf32, #tpu.memory_space<vmem>>, vector<8x128xf32>
    %cst = arith.constant dense<0.000000e+00> : vector<8x128xf32>
    %9 = tpu.matmul %7, %8, %cst {dimension_numbers = #tpu.dot_dimension_numbers<[1], [0], [0], [1], [0, 0, 1, 1], [], []>} : vector<8x8xf32>, vector<8x128xf32>, vector<8x128xf32> -> vector<8x128xf32>
    %c0_5 = arith.constant 0 : index
    %c0_6 = arith.constant 0 : index
    %10 = vector.load %arg5[%c0_5, %c0_6] : memref<1x128xf32, #tpu.memory_space<vmem>>, vector<1x128xf32>
    %11 = vector.broadcast %10 : vector<1x128xf32> to vector<8x128xf32>
    %12 = arith.mulf %11, %9 : vector<8x128xf32>
    %c0_7 = arith.constant 0 : index
    %c0_8 = arith.constant 0 : index
    %13 = vector.load %arg6[%c0_7, %c0_8] : memref<1x128xf32, #tpu.memory_space<vmem>>, vector<1x128xf32>
    %14 = vector.broadcast %13 : vector<1x128xf32> to vector<8x128xf32>
    %15 = arith.mulf %14, %6 : vector<8x128xf32>
    %16 = arith.addf %12, %15 : vector<8x128xf32>
    %c0_9 = arith.constant 0 : index
    %c0_10 = arith.constant 0 : index
    %17 = vector.load %arg9[%c0_9, %c0_10] : memref<128x8xf32, #tpu.memory_space<vmem>>, vector<128x8xf32>
    %cst_11 = arith.constant dense<0.000000e+00> : vector<8x8xf32>
    %18 = tpu.matmul %16, %17, %cst_11 {dimension_numbers = #tpu.dot_dimension_numbers<[1], [0], [0], [1], [0, 0, 1, 1], [], []>} : vector<8x128xf32>, vector<128x8xf32>, vector<8x8xf32> -> vector<8x8xf32>
    %19 = arith.mulf %16, %16 : vector<8x128xf32>
    %c0_12 = arith.constant 0 : index
    %c0_13 = arith.constant 0 : index
    %20 = vector.load %arg9[%c0_12, %c0_13] : memref<128x8xf32, #tpu.memory_space<vmem>>, vector<128x8xf32>
    %cst_14 = arith.constant dense<0.000000e+00> : vector<8x8xf32>
    %21 = tpu.matmul %19, %20, %cst_14 {dimension_numbers = #tpu.dot_dimension_numbers<[1], [0], [0], [1], [0, 0, 1, 1], [], []>} : vector<8x128xf32>, vector<128x8xf32>, vector<8x8xf32> -> vector<8x8xf32>
    %c0_15 = arith.constant 0 : index
    %c0_16 = arith.constant 0 : index
    %22 = vector.load %arg10[%c0_15, %c0_16] : memref<8x128xf32, #tpu.memory_space<vmem>>, vector<8x128xf32>
    %cst_17 = arith.constant dense<0.000000e+00> : vector<8x128xf32>
    %23 = tpu.matmul %18, %22, %cst_17 {dimension_numbers = #tpu.dot_dimension_numbers<[1], [0], [0], [1], [0, 0, 1, 1], [], []>} : vector<8x8xf32>, vector<8x128xf32>, vector<8x128xf32> -> vector<8x128xf32>
    %c0_18 = arith.constant 0 : index
    %c0_19 = arith.constant 0 : index
    %24 = vector.load %arg10[%c0_18, %c0_19] : memref<8x128xf32, #tpu.memory_space<vmem>>, vector<8x128xf32>
    %cst_20 = arith.constant dense<0.000000e+00> : vector<8x128xf32>
    %25 = tpu.matmul %21, %24, %cst_20 {dimension_numbers = #tpu.dot_dimension_numbers<[1], [0], [0], [1], [0, 0, 1, 1], [], []>} : vector<8x8xf32>, vector<8x128xf32>, vector<8x128xf32> -> vector<8x128xf32>
    %26 = arith.mulf %23, %23 : vector<8x128xf32>
    %27 = arith.subf %25, %26 : vector<8x128xf32>
    %cst_21 = arith.constant 0.000000e+00 : f32
    %28 = vector.broadcast %cst_21 : f32 to vector<8x128xf32>
    %29 = arith.maximumf %27, %28 : vector<8x128xf32>
    %30 = arith.subf %16, %23 : vector<8x128xf32>
    %cst_22 = arith.constant 9.99999996E-13 : f32
    %31 = vector.broadcast %cst_22 : f32 to vector<8x128xf32>
    %32 = arith.addf %29, %31 : vector<8x128xf32>
    %33 = math.rsqrt %32 : vector<8x128xf32>
    %34 = arith.mulf %30, %33 : vector<8x128xf32>
    %c0_23 = arith.constant 0 : index
    %c0_24 = arith.constant 0 : index
    %35 = vector.load %arg7[%c0_23, %c0_24] : memref<1x128xf32, #tpu.memory_space<vmem>>, vector<1x128xf32>
    %36 = vector.broadcast %35 : vector<1x128xf32> to vector<8x128xf32>
    %37 = arith.mulf %34, %36 : vector<8x128xf32>
    %c0_25 = arith.constant 0 : index
    %c0_26 = arith.constant 0 : index
    %38 = vector.load %arg8[%c0_25, %c0_26] : memref<1x128xf32, #tpu.memory_space<vmem>>, vector<1x128xf32>
    %39 = vector.broadcast %38 : vector<1x128xf32> to vector<8x128xf32>
    %40 = arith.addf %37, %39 : vector<8x128xf32>
    %c0_27 = arith.constant 0 : index
    %c0_28 = arith.constant 0 : index
    %41 = vector.load %arg11[%c0_27, %c0_28] : memref<8x128xf32, #tpu.memory_space<vmem>>, vector<8x128xf32>
    tpu.vector_store %arg11[%c0_27, %c0_28], %40 {strides = array<i32>} : memref<8x128xf32, #tpu.memory_space<vmem>>, vector<8x128xf32>,
    return
  }
  func.func @transform_0(%arg0: i32, %arg1: i32) -> (i32, i32) {
    %c0_i32 = arith.constant 0 : i32
    %c0_i32_0 = arith.constant 0 : i32
    return %c0_i32, %arg0 : i32, i32
  }
  func.func @transform_1(%arg0: i32, %arg1: i32) -> (i32, i32) {
    %c0_i32 = arith.constant 0 : i32
    %c0_i32_0 = arith.constant 0 : i32
    return %arg1, %c0_i32 : i32, i32
  }
  func.func @transform_2(%arg0: i32, %arg1: i32) -> (i32, i32) {
    %c0_i32 = arith.constant 0 : i32
    %c0_i32_0 = arith.constant 0 : i32
    %c0_i32_1 = arith.constant 0 : i32
    return %c0_i32, %c0_i32_0 : i32, i32
  }
  func.func @transform_3(%arg0: i32, %arg1: i32) -> (i32, i32) {
    %c0_i32 = arith.constant 0 : i32
    %c0_i32_0 = arith.constant 0 : i32
    return %c0_i32, %arg0 : i32, i32
  }
  func.func @transform_4(%arg0: i32, %arg1: i32) -> (i32, i32) {
    %c0_i32 = arith.constant 0 : i32
    %c0_i32_0 = arith.constant 0 : i32
    return %c0_i32, %arg0 : i32, i32
  }
  func.func @transform_5(%arg0: i32, %arg1: i32) -> (i32, i32) {
    %c0_i32 = arith.constant 0 : i32
    %c0_i32_0 = arith.constant 0 : i32
    return %c0_i32, %arg0 : i32, i32
  }
  func.func @transform_6(%arg0: i32, %arg1: i32) -> (i32, i32) {
    %c0_i32 = arith.constant 0 : i32
    %c0_i32_0 = arith.constant 0 : i32
    return %c0_i32, %arg0 : i32, i32
  }
  func.func @transform_7(%arg0: i32, %arg1: i32) -> (i32, i32) {
    %c0_i32 = arith.constant 0 : i32
    %c0_i32_0 = arith.constant 0 : i32
    %c0_i32_1 = arith.constant 0 : i32
    return %c0_i32, %c0_i32_0 : i32, i32
  }
  func.func @transform_8(%arg0: i32, %arg1: i32) -> (i32, i32) {
    %c0_i32 = arith.constant 0 : i32
    %c0_i32_0 = arith.constant 0 : i32
    %c0_i32_1 = arith.constant 0 : i32
    return %c0_i32, %c0_i32_0 : i32, i32
  }
  func.func @transform_9(%arg0: i32, %arg1: i32) -> (i32, i32) {
    %c0_i32 = arith.constant 0 : i32
    return %arg1, %arg0 : i32, i32
  }
}

</mosaic_0001>

<bundles_post_ra>
// kernel: tpu_custom_call.1
= control target key start
LH: loop header
LB: loop body
LE: loop exit
PB: predicated region body
PF: predicated region fallthrough
CT: control target
= control target key end

     0   :  { %vm39_vm0 = vcmask 64512   ;;  %v770_v2 = vmov 0.0   ;;  %vm771_vm1 = vmmov 0   ;;  %s932_s0 = inlined_call_operand.vmem [shape: f32[8,128], index: 0, kind: input, shape index: {}]   ;;  %s933_s1 = inlined_call_operand.vmem [shape: f32[8,8], index: 1, kind: input, shape index: {}]   ;;  %s934_s2 = inlined_call_operand.vmem [shape: f32[8,8], index: 2, kind: input, shape index: {}]   ;;  %s935_s3 = inlined_call_operand.vmem [shape: f32[1,128], index: 3, kind: input, shape index: {}]   ;;  %s936_s4 = inlined_call_operand.vmem [shape: f32[1,128], index: 4, kind: input, shape index: {}]   ;;  %s937_s5 = inlined_call_operand.vmem [shape: f32[1,128], index: 5, kind: input, shape index: {}]   ;;  %s938_s6 = inlined_call_operand.vmem [shape: f32[1,128], index: 6, kind: input, shape index: {}]   ;;  %s939_s7 = inlined_call_operand.vmem [shape: f32[128,8], index: 7, kind: input, shape index: {}]   ;;  %s940_s8 = inlined_call_operand.vmem [shape: f32[8,128], index: 8, kind: input, shape index: {}]   ;;  %s941_s9 = inlined_call_operand.hbm [shape: f32[8,128], index: 9, kind: output, shape index: {}]  }
   0x1   :  { %v827_v0 = vld [vmem:[%s932_s0] sm:$0xff]  ;;  %602 = vmatprep.subr.mxu0 %v770_v2  ;;  %604 = vmatprep.mubr.msk.f32.mxu0 %vm771_vm1, %v770_v2 }
   0x2   :  { %v37_v1 = vld [vmem:[%s934_s2] sm:$0xff] }
   0x3   :  { %14 = vsyncpa [#allocation4], 0  ;;  %603 = vmatpush3.msra.mxu0 %v827_v0  ;;  %607 = vmatprep.subr.mxu1 %v770_v2  ;;  %v210_v3 = vld [vmem:[%s939_s7] sm:$0xff]  ;;  %v211_v4 = vld [vmem:[%s939_s7 + $0x8] sm:$0xff]  ;;  %v772_v5 = vmov 0.0|0.0   ;;  %s773_s27 = smov [#allocation3]  }
   0x4   :  { %605 = vmatmul.mubr.msk.f32.vlgmr.msra.gmra.mrb[0].mxu0 %vm39_vm0, %v37_v1  ;;  %609 = vmatprep.mubr.msk.f32.mxu1 %vm771_vm1, %v770_v2  ;;  %v693_v6 = vpack.c.bf16 %v211_v4, %v210_v3  ;;  %v212_v7 = vld [vmem:[%s939_s7 + $0x10] sm:$0xff]  ;;  %v213_v8 = vld [vmem:[%s939_s7 + $0x18] sm:$0xff]  ;;  %v214_v10 = vld [vmem:[%s939_s7 + $0x20] sm:$0xff]  ;;  %s544_s28 = sshll.u32 %s773_s27, 4  ;;  %s545_s28 = int_to_ptr.vmem [resolvable:$true] %s544_s28 }
   0x5   :  { %644 = vmatprep.mubr.msk.f32.mxu0 %vm771_vm1, %v770_v2  ;;  %692 = vmatprep.subr.bf16.mxu0 %v772_v5  ;;  %v696_v9 = vpack.c.bf16 %v213_v8, %v212_v7  ;;  %v215_v11 = vld [vmem:[%s939_s7 + $0x28] sm:$0xff]  ;;  %v216_v13 = vld [vmem:[%s939_s7 + $0x30] sm:$0xff]  ;;  %v217_v14 = vld [vmem:[%s939_s7 + $0x38] sm:$0xff]  ;;  %s746_s29 = scalar_lea.vmem %s545_s28, 128  ;;  %p751_p1 = scmp.lt.s32.totalorder %s545_s28, %s545_s28 }
   0x6   :  { %694 = vmatpush3.bf16.msra.mxu0 %v693_v6  ;;  %v699_v12 = vpack.c.bf16 %v215_v11, %v214_v10  ;;  %v702_v15 = vpack.c.bf16 %v217_v14, %v216_v13  ;;  %v218_v16 = vld [vmem:[%s939_s7 + $0x40] sm:$0xff]  ;;  %v219_v17 = vld [vmem:[%s939_s7 + $0x48] sm:$0xff]  ;;  %v220_v19 = vld [vmem:[%s939_s7 + $0x50] sm:$0xff]  ;;  %p747_p0 = scmp.ne.s32.totalorder %s545_s28, %s746_s29  ;;  %p752_p2 = scmp.lt.s32.totalorder %s746_s29, %s746_s29 }
   0x7   :  { %695 = vmatprep.subr.bf16.mxu0 %v772_v5  ;;  %v705_v18 = vpack.c.bf16 %v219_v17, %v218_v16  ;;  %v221_v20 = vld [vmem:[%s939_s7 + $0x58] sm:$0xff]  ;;  %v222_v22 = vld [vmem:[%s939_s7 + $0x60] sm:$0xff]  ;;  %v223_v23 = vld [vmem:[%s939_s7 + $0x68] sm:$0xff] }
   0x8   :  { %v708_v21 = vpack.c.bf16 %v221_v20, %v220_v19  ;;  %v711_v24 = vpack.c.bf16 %v223_v23, %v222_v22  ;;  %v117_v25 = vld [vmem:[%s933_s1] sm:$0xff]  ;;  %v224_v28 = vld [vmem:[%s939_s7 + $0x70] sm:$0xff]  ;;  %v225_v29 = vld [vmem:[%s939_s7 + $0x78] sm:$0xff]  ;;  %p753_p3 = por %p752_p2, %p751_p1 }
   0x9   :  { %v714_v30 = vpack.c.bf16 %v225_v29, %v224_v28  ;;  %v555_v31 = vld [vmem:[%s936_s4] ss:$0 sm:$0xff] }
   0xa   :  { %697 = vmatpush3.bf16.msra.mxu0 %v696_v9  ;;  %v554_v32 = vld [vmem:[%s935_s3] ss:$0 sm:$0xff]  ;;  %v208_v33 = vmul.f32 %v555_v31, %v827_v0  ;;  %p754_p4 = pnand %p753_p3, %p747_p0 }
   0xb   :  { %698 = vmatprep.subr.bf16.mxu0 %v772_v5  ;;  %v367_v38 = vld [vmem:[%s940_s8] sm:$0xff] }
   0xc   :  { %v558_v54 = vld [vmem:[%s937_s5] ss:$0 sm:$0xff] }
   0xd   :  { %v559_v56 = vld [vmem:[%s938_s6] ss:$0 sm:$0xff] }
   0xe   :  { %700 = vmatpush3.bf16.msra.mxu0 %v699_v12 }
   0xf   :  { %701 = vmatprep.subr.bf16.mxu0 %v772_v5 }
  0x12   :  { %703 = vmatpush3.bf16.msra.mxu0 %v702_v15 }
  0x13   :  { %704 = vmatprep.subr.bf16.mxu0 %v772_v5 }
  0x16   :  { %706 = vmatpush3.bf16.msra.mxu0 %v705_v18 }
  0x17   :  { %707 = vmatprep.subr.bf16.mxu0 %v772_v5 }
  0x1a   :  { %709 = vmatpush3.bf16.msra.mxu0 %v708_v21 }
  0x1b   :  { %710 = vmatprep.subr.bf16.mxu0 %v772_v5 }
  0x1e   :  { %712 = vmatpush3.bf16.msra.mxu0 %v711_v24 }
  0x1f   :  { %713 = vmatprep.subr.bf16.mxu0 %v772_v5 }
  0x22   :  { %715 = vmatpush3.bf16.msra.mxu0 %v714_v30 }
  0x23   :  { %682 = vmatprep.subr.mxu0 %v770_v2 }
  0xd7   :  { %v109_v26 = vpop.f32.mrb[0].mxu0 }
  0xd8   :  { %v606_v27 = vpop.f32.mrb[1].mxu0  ;;  %608 = vmatpush3.msra.mxu1 %v109_v26 }
  0xd9   :  { %610 = vmatmul.mubr.msk.f32.vlgmr.msra.gmra.mrb[0].mxu1 %vm39_vm0, %v117_v25  ;;  %716 = vmatprep.subr.bf16.mxu1 %v772_v5 }
  0xda   :  { %718 = vmatpush3.bf16.msra.mxu1 %v693_v6  ;;  %679 = vmatprep.mubr.msk.f32.mxu1 %vm771_vm1, %v770_v2 }
  0xdb   :  { %719 = vmatprep.subr.bf16.mxu1 %v772_v5 }
  0xde   :  { %721 = vmatpush3.bf16.msra.mxu1 %v696_v9 }
  0xdf   :  { %722 = vmatprep.subr.bf16.mxu1 %v772_v5 }
  0xe2   :  { %724 = vmatpush3.bf16.msra.mxu1 %v699_v12 }
  0xe3   :  { %725 = vmatprep.subr.bf16.mxu1 %v772_v5 }
  0xe6   :  { %727 = vmatpush3.bf16.msra.mxu1 %v702_v15 }
  0xe7   :  { %728 = vmatprep.subr.bf16.mxu1 %v772_v5 }
  0xea   :  { %730 = vmatpush3.bf16.msra.mxu1 %v705_v18 }
  0xeb   :  { %731 = vmatprep.subr.bf16.mxu1 %v772_v5 }
  0xee   :  { %733 = vmatpush3.bf16.msra.mxu1 %v708_v21 }
  0xef   :  { %734 = vmatprep.subr.bf16.mxu1 %v772_v5 }
  0xf2   :  { %736 = vmatpush3.bf16.msra.mxu1 %v711_v24 }
  0xf3   :  { %737 = vmatprep.subr.bf16.mxu1 %v772_v5 }
  0xf6   :  { %739 = vmatpush3.bf16.msra.mxu1 %v714_v30 }
  0xf7   :  { %687 = vmatprep.subr.mxu1 %v770_v2 }
 0x1ac   :  { %v189_v34 = vpop.f32.mrb[0].mxu1 }
 0x1ad   :  { %v200_v35 = vmul.f32 %v554_v32, %v189_v34  ;;  %v611_v36 = vpop.f32.mrb[1].mxu1 }
 0x1af   :  { %v209_v37 = vadd.f32 %v208_v33, %v200_v35 }
 0x1b1   :  { %v296_v39 = vmul.f32 %v209_v37, %v209_v37  ;;  %645 = vmatmul.mubr.f32.vlgmr.msra.gmra.mrb[2].mxu0 %v209_v37 }
 0x1b2   :  { %683 = vmatpush3.msra.mxu0 %v367_v38  ;;  %684 = vmatprep.mubr.msk.f32.mxu0 %vm771_vm1, %v770_v2 }
 0x1b3   :  { %680 = vmatmul.mubr.f32.vlgmr.msra.gmra.mrb[2].mxu1 %v296_v39 }
 0x1b4   :  { %688 = vmatpush3.msra.mxu1 %v367_v38  ;;  %689 = vmatprep.mubr.msk.f32.mxu1 %vm771_vm1, %v770_v2 }
 0x284   :  { %v292_v40 = vpop.f32.mrb[2].mxu0 }
 0x285   :  { %v646_v41 = vpop.f32.mrb[3].mxu0  ;;  %685 = vmatmul.mubr.msk.f32.vlgmr.msra.gmra.mrb[4].mxu0 %vm39_vm0, %v292_v40 }
 0x286   :  { %v363_v42 = vpop.f32.mrb[2].mxu1 }
 0x287   :  { %v681_v43 = vpop.f32.mrb[3].mxu1  ;;  %690 = vmatmul.mubr.msk.f32.vlgmr.msra.gmra.mrb[4].mxu1 %vm39_vm0, %v363_v42 }
 0x358   :  { %v437_v44 = vpop.f32.mrb[4].mxu0 }
 0x359   :  { %v514_v45 = vmul.f32 %v437_v44, %v437_v44  ;;  %v686_v46 = vpop.f32.mrb[5].mxu0  ;;  %v517_v52 = vsub.f32 %v209_v37, %v437_v44 }
 0x35a   :  { %v510_v47 = vpop.f32.mrb[4].mxu1 }
 0x35b   :  { %v515_v48 = vsub.f32 %v510_v47, %v514_v45  ;;  %v691_v49 = vpop.f32.mrb[5].mxu1 }
 0x35d   :  { %v516_v50 = vmax.f32 %v515_v48, 0.0 }
 0x35f   :  { %v518_v51 = vadd.f32 1e-12, %v516_v50 }
 0x361   :  { %744 = vrsqrt.f32 %v518_v51 }
 0x36b   :  { %v745_v53 = vpop.eup %744 }
 0x36c   :  { %v520_v55 = vmul.f32 %v745_v53, %v517_v52 }
 0x36e   :  { %v528_v57 = vmul.f32 %v558_v54, %v520_v55 }
 0x370   :  { %v536_v58 = vadd.f32 %v559_v56, %v528_v57 }
 0x372   :  { %537 = vst [vmem:[#allocation3] sm:$0xff] %v536_v58 }
 0x373   :  { %757 = shalt.err (!%p754_p4)
}
 0x374   :  { %s758_s10 = scalar_lea.hbm %s941_s9, 128 }
 0x375   :  { %p759_p5 = scmp.ne.s32.totalorder %s941_s9, %s758_s10  ;;  %p762_p6 = scmp.lt.u32.totalorder %s758_s10, %s941_s9 }
 0x377   :  { %p764_p7 = pnand %p762_p6, %p759_p5 }
 0x379   :  { %767 = shalt.err (!%p764_p7)
}
 0x37a   :  { %547 = dma.vmem_to_hbm [thread:$0]  %s545_s28, 128, %s941_s9, [#allocation4]  }
 0x37b   :  { %768 = dma.done.wait [#allocation4], 128  }
 0x37c   :  { %769 = vsyncadd [#allocation4], 4294967168 }
 0x37d   :  { %551 = vsyncpa [#allocation4], 1 }

</bundles_post_ra>
